<compile_context>
chip_gen: v6e
topology: v6e:2x2x1
jax: 0.10.0
libtpu: 0.0.40
codegen_flags: <defaults>
</compile_context>

<pallas_src>
import functools

import jax
import jax.numpy as jnp
from jax.experimental import pallas as pl
from jax.experimental.pallas import tpu as pltpu

_PAD = 8  # sublane-aligned offset at which the pooled vector is parked in scratch


def _eca_kernel(w_ref, x_ref, o_ref, ps_ref, *, c, inv_hw):
    """Fused spatial mean + 3-tap channel conv + sigmoid + channel scaling."""
    # Spatial mean, accumulated in f32 (lane reduction; HW zero-padding is harmless).
    pooled = jnp.sum(x_ref[...].astype(jnp.float32), axis=-1, keepdims=True) * inv_hw  # (TB,C,1)

    # Zero-padded +/-1 channel shifts via a tiny VMEM scratch:
    #   rows [_PAD, _PAD+C)  <- pooled            (sublane-aligned store)
    #   prev = rows [_PAD-1, _PAD-1+C)            (p[i-1]; row _PAD-1 stays 0 -> left pad)
    #   nxt  = rows [_PAD+1, _PAD+1+C)            (p[i+1]; row _PAD+C stays 0 -> right pad)
    ps_ref[...] = jnp.zeros(ps_ref.shape, ps_ref.dtype)
    ps_ref[:, _PAD:_PAD + c, :] = pooled
    prev = ps_ref[:, _PAD - 1:_PAD - 1 + c, :]                        # (TB, C, 1) f32
    nxt = ps_ref[:, _PAD + 1:_PAD + 1 + c, :]                         # (TB, C, 1) f32

    # Conv1d(1, 1, 3, padding=1, bias=False): out[i] = w0*p[i-1] + w1*p[i] + w2*p[i+1]
    conv = w_ref[0] * prev + w_ref[1] * pooled + w_ref[2] * nxt       # (TB, C, 1) f32
    scale = 1.0 / (1.0 + jnp.exp(-conv))                              # sigmoid (EUP)

    # Channel re-scaling, broadcast across the HW lanes; output keeps the input dtype.
    o_ref[...] = (x_ref[...] * scale).astype(o_ref.dtype)


def _pick_batch_tile(b, per_batch_bytes, target_bytes=2 << 20):
    """Largest divisor TB of b with block <= ~2 MiB and (if possible) >= 2 grid steps."""
    best = 1
    for tb in range(1, b + 1):
        if b % tb != 0:
            continue
        if tb > 1 and tb * per_batch_bytes > target_bytes:
            continue
        if b > 1 and b // tb < 2:
            continue
        best = tb
    return best


def eca_forward(x, conv_w):
    """ECALayer forward.  x: (B, C, H, W); conv_w: (3,) Conv1d taps.  Preserves x.dtype."""
    b, c, h, w = x.shape
    hw = h * w
    hwp = pl.cdiv(hw, 128) * 128                     # lane-dense last dim (multiple of 128)

    x3 = x.reshape(b, c, hw)
    if hwp != hw:
        x3 = jnp.pad(x3, ((0, 0), (0, 0), (0, hwp - hw)))

    itemsize = jnp.dtype(x.dtype).itemsize
    tb = _pick_batch_tile(b, c * hwp * itemsize)
    # NOTE: a single batch element larger than the per-step VMEM budget would need an
    # extra HW grid axis with a (C, 1) f32 accumulator; not required for these shapes.

    w3 = conv_w.reshape(-1).astype(jnp.float32)      # the 3 conv taps -> SMEM

    kernel = functools.partial(_eca_kernel, c=c, inv_hw=1.0 / hw)

    out = pl.pallas_call(
        kernel,
        out_shape=jax.ShapeDtypeStruct((b, c, hwp), x.dtype),
        grid_spec=pltpu.PrefetchScalarGridSpec(
            num_scalar_prefetch=0,
            grid=(b // tb,),
            in_specs=[
                pl.BlockSpec(memory_space=pltpu.MemorySpace.SMEM),    # 3 conv taps
                pl.BlockSpec((tb, c, hwp), lambda i: (i, 0, 0)),      # TB batch elems / step
            ],
            out_specs=pl.BlockSpec((tb, c, hwp), lambda i: (i, 0, 0)),
            scratch_shapes=[pltpu.VMEM((tb, c + 2 * _PAD, 1), jnp.float32)],
        ),
        compiler_params=pltpu.CompilerParams(
            dimension_semantics=("parallel",),       # batch steps are independent
            vmem_limit_bytes=32 * 1024 * 1024,       # blocks <= ~2 MiB, x4 double-buffered
        ),
        cost_estimate=pl.CostEstimate(
            flops=int(2 * b * c * hwp + 8 * b * c),
            transcendentals=int(b * c),
            bytes_accessed=int(2 * b * c * hwp * itemsize + 3 * 4),
        ),
    )(w3, x3)

    if hwp != hw:
        out = out[:, :, :hw]
    return out.reshape(b, c, h, w)


# --------------------------------------------------------------------------
# Pure-JAX reference (mirrors the PyTorch module op-for-op)
# --------------------------------------------------------------------------
def _eca_reference(x, conv_w):
    b, c, h, w = x.shape
    pooled = jnp.mean(x, axis=(2, 3))                                       # (B, C)
    pp = jnp.pad(pooled, ((0, 0), (1, 1)))
    conv = (conv_w[0] * pp[:, 0:c]
            + conv_w[1] * pp[:, 1:c + 1]
            + conv_w[2] * pp[:, 2:c + 2])                                   # (B, C)
    scale = jax.nn.sigmoid(conv)
    return x * scale[:, :, None, None]


if __name__ == "__main__":
    key = jax.random.PRNGKey(0)
    kx1, kx2, kw = jax.random.split(key, 3)

    # Conv1d(1, 1, 3, bias=False) weight flattened to its 3 taps (deterministic init).
    conv_w = jax.random.normal(kw, (3,), jnp.float32) * 0.5

    eca = jax.jit(eca_forward)

    # Case 1: the nominal small demo shape (HW already a multiple of 128).
    x1 = jax.random.normal(kx1, (2, 4, 16, 16), jnp.float32)
    out1 = jax.block_until_ready(eca(x1, conv_w))
    assert out1.shape == x1.shape and out1.dtype == x1.dtype
    assert bool(jnp.all(jnp.isfinite(out1)))
    ref1 = _eca_reference(x1, conv_w)
    err1 = float(jnp.max(jnp.abs(out1 - ref1)))
    assert bool(jnp.allclose(out1, ref1, rtol=1e-4, atol=1e-4)), err1

    # Case 2: H*W not a multiple of 128 (exercises lane padding) and C > 8.
    x2 = jax.random.normal(kx2, (2, 16, 7, 7), jnp.float32)
    out2 = jax.block_until_ready(eca(x2, conv_w))
    ref2 = _eca_reference(x2, conv_w)
    err2 = float(jnp.max(jnp.abs(out2 - ref2)))
    assert bool(jnp.allclose(out2, ref2, rtol=1e-4, atol=1e-4)), err2

    print("KERNEL_OK")
</pallas_src>

<mosaic_0001>
module attributes {stable_mosaic.version = 11 : i64} {
  func.func @_eca_kernel(%arg0: i32, %arg1: memref<3xf32, #tpu.memory_space<smem>>, %arg2: memref<1x4x256xf32, #tpu.memory_space<vmem>>, %arg3: memref<1x4x256xf32, #tpu.memory_space<vmem>>, %arg4: memref<1x20x1xf32, #tpu.memory_space<vmem>>) attributes {dimension_semantics = [#tpu.dimension_semantics<parallel>], iteration_bounds = array<i64: 2>, scalar_prefetch = 0 : i64, scratch_operands = 1 : i64, tpu.core_type = #tpu.core_type<tc>, window_params = [{transform_indices = @transform_0, window_bounds = array<i64: 3>}, {transform_indices = @transform_1, window_bounds = array<i64: 1, 4, 256>}, {transform_indices = @transform_2, window_bounds = array<i64: 1, 4, 256>}]} {
    %c0 = arith.constant 0 : index
    %c0_0 = arith.constant 0 : index
    %c0_1 = arith.constant 0 : index
    %0 = vector.load %arg2[%c0, %c0_0, %c0_1] : memref<1x4x256xf32, #tpu.memory_space<vmem>>, vector<1x4x256xf32>
    %cst = arith.constant dense<0.000000e+00> : vector<1x4xf32>
    %1 = vector.multi_reduction <add>, %0, %cst [2] : vector<1x4x256xf32> to vector<1x4xf32>
    %2 = vector.shape_cast %1 : vector<1x4xf32> to vector<1x4x1xf32>
    %cst_2 = arith.constant 3.906250e-03 : f32
    %3 = vector.broadcast %cst_2 : f32 to vector<1x4x1xf32>
    %4 = arith.mulf %2, %3 : vector<1x4x1xf32>
    %cst_3 = arith.constant 0.000000e+00 : f32
    %5 = vector.broadcast %cst_3 : f32 to vector<1x20x1xf32>
    %c0_4 = arith.constant 0 : index
    %c0_5 = arith.constant 0 : index
    %c0_6 = arith.constant 0 : index
    %6 = vector.load %arg4[%c0_4, %c0_5, %c0_6] : memref<1x20x1xf32, #tpu.memory_space<vmem>>, vector<1x20x1xf32>
    tpu.vector_store %arg4[%c0_4, %c0_5, %c0_6], %5 {strides = array<i32>} : memref<1x20x1xf32, #tpu.memory_space<vmem>>, vector<1x20x1xf32>,
    %c0_7 = arith.constant 0 : index
    %c8 = arith.constant 8 : index
    %c0_8 = arith.constant 0 : index
    %7 = vector.load %arg4[%c0_7, %c8, %c0_8] : memref<1x20x1xf32, #tpu.memory_space<vmem>>, vector<1x4x1xf32>
    tpu.vector_store %arg4[%c0_7, %c8, %c0_8], %4 {strides = array<i32>} : memref<1x20x1xf32, #tpu.memory_space<vmem>>, vector<1x4x1xf32>,
    %c0_9 = arith.constant 0 : index
    %c7 = arith.constant 7 : index
    %c0_10 = arith.constant 0 : index
    %8 = vector.load %arg4[%c0_9, %c7, %c0_10] : memref<1x20x1xf32, #tpu.memory_space<vmem>>, vector<1x4x1xf32>
    %c0_11 = arith.constant 0 : index
    %c9 = arith.constant 9 : index
    %c0_12 = arith.constant 0 : index
    %9 = vector.load %arg4[%c0_11, %c9, %c0_12] : memref<1x20x1xf32, #tpu.memory_space<vmem>>, vector<1x4x1xf32>
    %c0_13 = arith.constant 0 : index
    %10 = memref.load %arg1[%c0_13] : memref<3xf32, #tpu.memory_space<smem>>
    %11 = vector.broadcast %10 : f32 to vector<1x4x1xf32>
    %12 = arith.mulf %11, %8 : vector<1x4x1xf32>
    %c1 = arith.constant 1 : index
    %13 = memref.load %arg1[%c1] : memref<3xf32, #tpu.memory_space<smem>>
    %14 = vector.broadcast %13 : f32 to vector<1x4x1xf32>
    %15 = arith.mulf %14, %4 : vector<1x4x1xf32>
    %16 = arith.addf %12, %15 : vector<1x4x1xf32>
    %c2 = arith.constant 2 : index
    %17 = memref.load %arg1[%c2] : memref<3xf32, #tpu.memory_space<smem>>
    %18 = vector.broadcast %17 : f32 to vector<1x4x1xf32>
    %19 = arith.mulf %18, %9 : vector<1x4x1xf32>
    %20 = arith.addf %16, %19 : vector<1x4x1xf32>
    %cst_14 = arith.constant 0.000000e+00 : f32
    %21 = vector.broadcast %cst_14 : f32 to vector<1x4x1xf32>
    %22 = arith.subf %21, %20 : vector<1x4x1xf32>
    %23 = math.exp %22 : vector<1x4x1xf32>
    %cst_15 = arith.constant 1.000000e+00 : f32
    %24 = vector.broadcast %cst_15 : f32 to vector<1x4x1xf32>
    %25 = arith.addf %24, %23 : vector<1x4x1xf32>
    %cst_16 = arith.constant 1.000000e+00 : f32
    %26 = vector.broadcast %cst_16 : f32 to vector<1x4x1xf32>
    %27 = arith.divf %26, %25 : vector<1x4x1xf32>
    %c0_17 = arith.constant 0 : index
    %c0_18 = arith.constant 0 : index
    %c0_19 = arith.constant 0 : index
    %28 = vector.load %arg2[%c0_17, %c0_18, %c0_19] : memref<1x4x256xf32, #tpu.memory_space<vmem>>, vector<1x4x256xf32>
    %29 = vector.broadcast %27 : vector<1x4x1xf32> to vector<1x4x256xf32>
    %30 = arith.mulf %28, %29 : vector<1x4x256xf32>
    %c0_20 = arith.constant 0 : index
    %c0_21 = arith.constant 0 : index
    %c0_22 = arith.constant 0 : index
    %31 = vector.load %arg3[%c0_20, %c0_21, %c0_22] : memref<1x4x256xf32, #tpu.memory_space<vmem>>, vector<1x4x256xf32>
    tpu.vector_store %arg3[%c0_20, %c0_21, %c0_22], %30 {strides = array<i32>} : memref<1x4x256xf32, #tpu.memory_space<vmem>>, vector<1x4x256xf32>,
    return
  }
  func.func @transform_0(%arg0: i32) -> i32 {
    %c0_i32 = arith.constant 0 : i32
    %c0_i32_0 = arith.constant 0 : i32
    return %c0_i32 : i32
  }
  func.func @transform_1(%arg0: i32) -> (i32, i32, i32) {
    %c0_i32 = arith.constant 0 : i32
    %c0_i32_0 = arith.constant 0 : i32
    %c0_i32_1 = arith.constant 0 : i32
    return %arg0, %c0_i32, %c0_i32_0 : i32, i32, i32
  }
  func.func @transform_2(%arg0: i32) -> (i32, i32, i32) {
    %c0_i32 = arith.constant 0 : i32
    %c0_i32_0 = arith.constant 0 : i32
    %c0_i32_1 = arith.constant 0 : i32
    return %arg0, %c0_i32, %c0_i32_0 : i32, i32, i32
  }
}

</mosaic_0001>

<bundles_post_ra>
// kernel: eca_forward.1
= control target key start
LH: loop header
LB: loop body
LE: loop exit
PB: predicated region body
PF: predicated region fallthrough
CT: control target
= control target key end

     0   :  { %7 = vsyncpa [#allocation4], 0  ;;  %s367_s9 = smov 0   ;;  %s414_s0 = inlined_call_operand.vmem [shape: f32[3], index: 0, kind: input, shape index: {}]   ;;  %s415_s1 = inlined_call_operand.vmem [shape: f32[2,4,256], index: 1, kind: input, shape index: {}]   ;;  %s416_s2 = inlined_call_operand.vmem [shape: f32[2,4,256], index: 2, kind: output, shape index: {}]  }
   0x1 LB: > { %s373_s10 = sadd.s32 4294967295, %s346_s9   ;;  %p278_p0 = scmp.ge.s32.totalorder %s346_s9, 1  ;;  %s346_s9 = sphi %s367_s9, %s13_s9  }
   0x2   : > { %p91_p1 = scmp.lt.s32.totalorder %s346_s9, 3  ;;  %s104_s13 = sshll.u32 %s414_s0, 4  ;;  %s105_s13 = int_to_ptr.vmem [resolvable:$true] %s104_s13 }
   0x3   : > { %p301_p3 = scmp.eq.s32.totalorder %s373_s10, 0  ;;  %s321_s15 = scalar_lea.vmem %s105_s13, 16 }
   0x4   : > { %p380_p2 = pnand %p278_p0, %p91_p1  ;;  %p322_p6 = scmp.ne.s32.totalorder %s105_s13, %s321_s15 }
   0x5   : > { %p329_p10 = scmp.lt.s32.totalorder %s105_s13, %s105_s13  ;;  %p330_p11 = scmp.lt.s32.totalorder %s321_s15, %s321_s15 }
   0x6   : > { %p297_p4 = pneg %p380_p2 }
   0x7   : > { %p331_p12 = por %p330_p11, %p329_p10 }
   0x8   : > { %p298_p5 = pnand %p301_p3, %p297_p4 }
   0xa   : > { %p323_p7 = pneg %p298_p5 }
   0xc   : > { %p324_p8 = pnand %p323_p7, %p322_p6 }
   0xe   : > { %p325_p9 = pneg %p324_p8 }
  0x10   : > { %p332_p13 = pnand %p331_p12, %p325_p9 }
  0x12   : > { %335 = shalt.err (!%p332_p13)
}
  0x13   : > { %s348_s16 = smov [#allocation3]   ;;  %125 = sbr.rel (%p380_p2) target bundleno = 355 (0x163), region = 28 }
  0x14   : > { %300 = dma.vmem_to_smem (!%p298_p5), %s105_s13, 16, %s348_s16, [#allocation4]  }
  0x18   : > { %341 = dma.done.wait (%p301_p3), [#allocation4], 16  }
  0x19   : > { %343 = vsyncadd (%p301_p3), [#allocation4], 4294967280 }
  0x1a   : > { %131 = sfence }
  0x1b   : > { %p148_p0 = scmp.lt.s32.totalorder %s373_s10, 1  ;;  %vm169_vm0 = vcmask 7168   ;;  %vm172_vm1 = vcmask 3072   ;;  %v349_v0 = vmov 0.0   ;;  %vm162_vm2 = vcmask 1043456   ;;  %s177_s21 = sld [smem:[#allocation3]] }
  0x1c   : > { %170 = vst.msk [vmem:[#allocation2] sm:$0xff] %vm169_vm0, %v349_v0  ;;  %171 = vst.msk [vmem:[#allocation2 + $0x8] sm:$0xff] %vm169_vm0, %v349_v0  ;;  %v350_v6 = vmov 0   ;;  %s287_s22 = sld [smem:[#allocation3 + $0x1]]  ;;  %v351_v24 = vmov 839922192   ;;  %v202_v26 = vlaneseq }
  0x1d   : > { %s419_s10 = smov (!%p148_p0, %s373_s10), 1  ;;  %315 = vset.pattern.permute.xlu0 %v350_v6  ;;  %s288_s23 = sld [smem:[#allocation3 + $0x2]]  ;;  %v200_v25 = vunpack.c.l.s4 %v351_v24 }
  0x1e   : > { %s291_s17 = sshll.u32 %s419_s10, 3  ;;  %v203_v28 = vshrl.u32 %v202_v26, 7 }
  0x1f   : > { %s152_s20 = scalar_lea.vmem %s415_s1, %s291_s17  ;;  %v201_v27 = vunpack.c.0.s8 %v200_v25  ;;  %s157_s26 = scalar_lea.vmem %s416_s2, %s291_s17 }
  0x20   : > { %v158_v1 = vld [vmem:[%s152_s20] sm:$0xff] }
  0x21   : > { %v160_v2 = vcombine.high %v158_v1, %v158_v1  ;;  %v163_v3 = vsel %vm162_vm2, %v158_v1, 0.0  ;;  %v178_v9 = vstv %s177_s21  ;;  %v204_v29 = vsub.s32 %v201_v27, %v203_v28 }
  0x22   : > { %v181_v10 = vstv %s287_s22 }
  0x23   : > { %v164_v4 = vsel %vm162_vm2, %v160_v2, 0.0  ;;  %v185_v11 = vstv %s288_s23 }
  0x24   : > { %v165_v5 = vadd.f32 %v164_v4, %v163_v3 }
  0x26   : > { %166 = vadd.xlane.f32.xlu0 %v165_v5 }
  0xaf   : > { %v167_v7 = vpop.xlane.xlu0 %166 }
  0xb0   : > { %v168_v8 = vmul.f32 0.00390625, %v167_v7 }
  0xb2   : > { %174 = vst.msk [vmem:[#allocation2 + $0x8] sm:$0xf] %vm172_vm1, %v168_v8  ;;  %v182_v15 = vmul.f32 %v181_v10, %v168_v8 }
  0xb9   : > { %v175_v12 = vld [vmem:[#allocation2 + $0x7] sm:$0xf] }
  0xba   : > { %v176_v13 = vld [vmem:[#allocation2 + $0x9] sm:$0xf]  ;;  %v179_v14 = vmul.f32 %v178_v9, %v175_v12 }
  0xbb   : > { %v186_v17 = vmul.f32 %v185_v11, %v176_v13 }
  0xbc   : > { %v183_v16 = vadd.f32 %v182_v15, %v179_v14 }
  0xbe   : > { %v187_v18 = vadd.f32 %v186_v17, %v183_v16 }
  0xc0   : > { %v188_v19 = vsub.f32 0.0, %v187_v18 }
  0xc2   : > { %v189_v20 = vmul.f32 1.442695, %v188_v19 }
  0xc4   : > { %317 = vpow2.f32 %v189_v20 }
  0xd1   : > { %v318_v21 = vpop.eup %317 }
  0xd2   : > { %v191_v22 = vadd.f32 1.0, %v318_v21 }
  0xd4   : > { %319 = vrcp.f32 %v191_v22 }
  0xe1   : > { %v320_v23 = vpop.eup %319 }
  0xe2   : > { %197 = vperm.xlu0 %315, %v320_v23  }
 0x15d   : > { %v198_v30 = vpop.permute.xlu0 %197 }
 0x15e   : > { %v205_v31 = vrot.slane %v198_v30, %v204_v29 }
 0x160   : > { %v207_v32 = vmul.f32 %v205_v31, %v158_v1 }
 0x162   : > { %208 = vst [vmem:[%s157_s26] sm:$0xff] %v207_v32 }
 0x163 PF: > { %s13_s9 = sadd.s32 1, %s346_s9  }
 0x164   : > { %p10_p1 = scmp.ge.s32.totalorder %s13_s9, 4  }
 0x166   :  { %12 = sbr.rel (!%p10_p1) target bundleno = 1 (0x1), region = 63 }
 0x16b   :  { %230 = vsyncpa [#allocation4], 1 }
 0x16c   :  { %232 = vsyncpa [#allocation4 + $0x1], 1 }

</bundles_post_ra>
